<compile_context>
chip_gen: v7x
topology: tpu7x:2x2x1
jax: 0.10.0
libtpu: 0.0.40
codegen_flags: <defaults>
</compile_context>

<pallas_src>
import jax
import jax.numpy as jnp
from jax.experimental import pallas as pl
from jax.experimental.pallas import tpu as pltpu

EPS = 1e-5
NEG_SLOPE = 0.1


def disc_stats_kernel(x_ref, w1_ref, g1_ref, b1_ref,
                      w2_ref, g2_ref, b2_ref, w3_ref, o_ref):
    mm_dtype = w1_ref.dtype  # native MXU dtype (bf16 fast path); accumulate in f32

    def bn_lrelu(h, gamma, beta):
        # BatchNorm1d (train mode, biased variance), folded to scale/shift, all in f32.
        # One-pass moments: the two column reductions are independent.
        mean = jnp.mean(h, axis=0, keepdims=True)
        mean_sq = jnp.mean(h * h, axis=0, keepdims=True)
        var = mean_sq - mean * mean
        scale = gamma * jax.lax.rsqrt(var + EPS)         # (1, hidden)
        shift = beta - mean * scale                      # (1, hidden)
        hn = h * scale + shift                           # 2 VPU ops/elem, 2 broadcasts
        return jnp.maximum(hn, NEG_SLOPE * hn)           # LeakyReLU(0.1)

    # Layer 1: Linear -> BN -> LeakyReLU  (x cast to mm_dtype in-kernel, not in wrapper)
    h1 = jnp.dot(x_ref[...].astype(mm_dtype), w1_ref[...],
                 preferred_element_type=jnp.float32)
    h1 = bn_lrelu(h1, g1_ref[...], b1_ref[...])

    # Layer 2: Linear -> BN -> LeakyReLU
    h2 = jnp.dot(h1.astype(mm_dtype), w2_ref[...],
                 preferred_element_type=jnp.float32)
    h2 = bn_lrelu(h2, g2_ref[...], b2_ref[...])

    # Output layer: Linear (w3 columns zero-padded to a lane-dense width at init).
    o_ref[...] = jnp.dot(h2.astype(mm_dtype), w3_ref[...],
                         preferred_element_type=jnp.float32)


def prepare_params(params, *, matmul_dtype=jnp.bfloat16):
    """One-time preparation: cast matmul weights to the MXU dtype and pad w3 to a
    lane-dense (multiple-of-128) column count. Do this once, not per forward call."""
    hidden = params["w1"].shape[1]
    out_size = params["w3"].shape[1]
    out_pad = max(128, ((out_size + 127) // 128) * 128)
    w3p = jnp.zeros((hidden, out_pad), matmul_dtype)
    w3p = w3p.at[:, :out_size].set(params["w3"].astype(matmul_dtype))
    return dict(
        w1=params["w1"].astype(matmul_dtype),
        w2=params["w2"].astype(matmul_dtype),
        w3=w3p,
        g1=params["g1"], b1=params["b1"],
        g2=params["g2"], b2=params["b2"],
        out_size=out_size,
        out_pad=out_pad,
    )


def disc_statistics(x, prep):
    """Fused forward. x: (B, in) f32 (cast to bf16 inside the kernel).
    Linear weights stored transposed as (in, out)."""
    B = x.shape[0]
    hidden = prep["w1"].shape[1]
    out_pad = prep["out_pad"]
    out_size = prep["out_size"]

    args = (x, prep["w1"], prep["g1"], prep["b1"],
            prep["w2"], prep["g2"], prep["b2"], prep["w3"])

    # VMEM budget: operands + output + intermediates (h1/h2 f32 + bf16 copies + BN temps).
    operand_bytes = sum(a.size * a.dtype.itemsize for a in args) + B * out_pad * 4
    interm_bytes = B * hidden * (4 + 4 + 2 + 2) + 8 * hidden * 4
    vmem_limit = max(2 * (operand_bytes + interm_bytes), 4 * 1024 * 1024)

    vmem_spec = pl.BlockSpec(memory_space=pltpu.MemorySpace.VMEM)

    out = pl.pallas_call(
        disc_stats_kernel,
        out_shape=jax.ShapeDtypeStruct((B, out_pad), jnp.float32),
        in_specs=[vmem_spec] * len(args),
        out_specs=vmem_spec,
        compiler_params=pltpu.CompilerParams(vmem_limit_bytes=int(vmem_limit)),
    )(*args)

    return out[:, :out_size]


def init_params(key, input_size, hidden_size, output_size):
    k1, k2, k3, kg1, kg2 = jax.random.split(key, 5)
    # nn.init.normal_(linear.weight, 0, 0.02); stored transposed (in, out).
    w1 = 0.02 * jax.random.normal(k1, (input_size, hidden_size), jnp.float32)
    w2 = 0.02 * jax.random.normal(k2, (hidden_size, hidden_size), jnp.float32)
    w3 = 0.02 * jax.random.normal(k3, (hidden_size, output_size), jnp.float32)
    # nn.init.normal_(bn.weight, 1, 0.02); nn.init.constant_(bn.bias, 0)
    g1 = 1.0 + 0.02 * jax.random.normal(kg1, (1, hidden_size), jnp.float32)
    g2 = 1.0 + 0.02 * jax.random.normal(kg2, (1, hidden_size), jnp.float32)
    b1 = jnp.zeros((1, hidden_size), jnp.float32)
    b2 = jnp.zeros((1, hidden_size), jnp.float32)
    return dict(w1=w1, g1=g1, b1=b1, w2=w2, g2=g2, b2=b2, w3=w3)


def _bn_lrelu_ref(h, g, b):
    mean = h.mean(axis=0, keepdims=True)
    var = ((h - mean) ** 2).mean(axis=0, keepdims=True)
    hn = (h - mean) / jnp.sqrt(var + EPS) * g + b
    return jnp.where(hn > 0, hn, NEG_SLOPE * hn)


def reference_f32(x, p):
    """PyTorch-faithful full-f32 reference."""
    h = _bn_lrelu_ref(x @ p["w1"], p["g1"], p["b1"])
    h = _bn_lrelu_ref(h @ p["w2"], p["g2"], p["b2"])
    return h @ p["w3"]


def reference_mixed(x, p, dt=jnp.bfloat16):
    """Reference mirroring the kernel's precision: bf16 matmul operands, f32 BN math."""
    def dot(a, w):
        return jnp.dot(a.astype(dt), w.astype(dt), preferred_element_type=jnp.float32)
    h = _bn_lrelu_ref(dot(x, p["w1"]), p["g1"], p["b1"])
    h = _bn_lrelu_ref(dot(h, p["w2"]), p["g2"], p["b2"])
    return dot(h, p["w3"])


if __name__ == "__main__":
    # Small shapes consistent with the module's (batch, features) forward.
    batch, input_size, hidden_size, output_size = 8, 64, 128, 1

    key = jax.random.PRNGKey(0)
    kx, kp = jax.random.split(key)
    x = jax.random.normal(kx, (batch, input_size), jnp.float32)
    params = init_params(kp, input_size, hidden_size, output_size)
    prep = prepare_params(params)  # one-time: pre-cast weights, pre-pad w3

    out = disc_statistics(x, prep)
    out = jax.block_until_ready(out)
    assert out.shape == (batch, output_size)

    # Tight check against a reference that uses the same mixed precision as the kernel.
    ref_mixed = reference_mixed(x, params)
    assert jnp.allclose(out, ref_mixed, atol=2e-3, rtol=1e-2), (
        jnp.max(jnp.abs(out - ref_mixed)))

    # Loose sanity check against the full-f32 PyTorch-faithful reference
    # (differences are purely from the bf16 matmul operands).
    ref_f32 = reference_f32(x, params)
    assert jnp.allclose(out, ref_f32, atol=1e-1, rtol=1e-1), (
        jnp.max(jnp.abs(out - ref_f32)))

    print("KERNEL_OK")
</pallas_src>

<mosaic_0001>
module attributes {stable_mosaic.version = 11 : i64} {
  func.func @disc_stats_kernel(%arg0: memref<8x64xf32, #tpu.memory_space<vmem>>, %arg1: memref<64x128xbf16, #tpu.memory_space<vmem>>, %arg2: memref<1x128xf32, #tpu.memory_space<vmem>>, %arg3: memref<1x128xf32, #tpu.memory_space<vmem>>, %arg4: memref<128x128xbf16, #tpu.memory_space<vmem>>, %arg5: memref<1x128xf32, #tpu.memory_space<vmem>>, %arg6: memref<1x128xf32, #tpu.memory_space<vmem>>, %arg7: memref<128x128xbf16, #tpu.memory_space<vmem>>, %arg8: memref<8x128xf32, #tpu.memory_space<vmem>>) attributes {dimension_semantics = [], scalar_prefetch = 0 : i64, scratch_operands = 0 : i64, tpu.core_type = #tpu.core_type<tc>} {
    %c0 = arith.constant 0 : index
    %c0_0 = arith.constant 0 : index
    %0 = vector.load %arg0[%c0, %c0_0] : memref<8x64xf32, #tpu.memory_space<vmem>>, vector<8x64xf32>
    %1 = arith.truncf %0 : vector<8x64xf32> to vector<8x64xbf16>
    %c0_1 = arith.constant 0 : index
    %c0_2 = arith.constant 0 : index
    %2 = vector.load %arg1[%c0_1, %c0_2] : memref<64x128xbf16, #tpu.memory_space<vmem>>, vector<64x128xbf16>
    %cst = arith.constant dense<0.000000e+00> : vector<8x128xf32>
    %3 = tpu.matmul %1, %2, %cst {dimension_numbers = #tpu.dot_dimension_numbers<[1], [0], [0], [1], [0, 0, 1, 1], [], []>} : vector<8x64xbf16>, vector<64x128xbf16>, vector<8x128xf32> -> vector<8x128xf32>
    %c0_3 = arith.constant 0 : index
    %c0_4 = arith.constant 0 : index
    %4 = vector.load %arg2[%c0_3, %c0_4] : memref<1x128xf32, #tpu.memory_space<vmem>>, vector<1x128xf32>
    %c0_5 = arith.constant 0 : index
    %c0_6 = arith.constant 0 : index
    %5 = vector.load %arg3[%c0_5, %c0_6] : memref<1x128xf32, #tpu.memory_space<vmem>>, vector<1x128xf32>
    %cst_7 = arith.constant dense<0.000000e+00> : vector<128xf32>
    %6 = vector.multi_reduction <add>, %3, %cst_7 [0] : vector<8x128xf32> to vector<128xf32>
    %7 = vector.shape_cast %6 : vector<128xf32> to vector<1x128xf32>
    %cst_8 = arith.constant 8.000000e+00 : f32
    %8 = vector.broadcast %cst_8 : f32 to vector<1x128xf32>
    %9 = arith.divf %7, %8 : vector<1x128xf32>
    %10 = arith.mulf %3, %3 : vector<8x128xf32>
    %cst_9 = arith.constant dense<0.000000e+00> : vector<128xf32>
    %11 = vector.multi_reduction <add>, %10, %cst_9 [0] : vector<8x128xf32> to vector<128xf32>
    %12 = vector.shape_cast %11 : vector<128xf32> to vector<1x128xf32>
    %cst_10 = arith.constant 8.000000e+00 : f32
    %13 = vector.broadcast %cst_10 : f32 to vector<1x128xf32>
    %14 = arith.divf %12, %13 : vector<1x128xf32>
    %15 = arith.mulf %9, %9 : vector<1x128xf32>
    %16 = arith.subf %14, %15 : vector<1x128xf32>
    %cst_11 = arith.constant 9.99999974E-6 : f32
    %17 = vector.broadcast %cst_11 : f32 to vector<1x128xf32>
    %18 = arith.addf %16, %17 : vector<1x128xf32>
    %19 = math.rsqrt %18 : vector<1x128xf32>
    %20 = arith.mulf %4, %19 : vector<1x128xf32>
    %21 = arith.mulf %9, %20 : vector<1x128xf32>
    %22 = arith.subf %5, %21 : vector<1x128xf32>
    %23 = vector.broadcast %20 : vector<1x128xf32> to vector<8x128xf32>
    %24 = arith.mulf %3, %23 : vector<8x128xf32>
    %25 = vector.broadcast %22 : vector<1x128xf32> to vector<8x128xf32>
    %26 = arith.addf %24, %25 : vector<8x128xf32>
    %cst_12 = arith.constant 1.000000e-01 : f32
    %27 = vector.broadcast %cst_12 : f32 to vector<8x128xf32>
    %28 = arith.mulf %27, %26 : vector<8x128xf32>
    %29 = arith.maximumf %26, %28 : vector<8x128xf32>
    %30 = arith.truncf %29 : vector<8x128xf32> to vector<8x128xbf16>
    %c0_13 = arith.constant 0 : index
    %c0_14 = arith.constant 0 : index
    %31 = vector.load %arg4[%c0_13, %c0_14] : memref<128x128xbf16, #tpu.memory_space<vmem>>, vector<128x128xbf16>
    %cst_15 = arith.constant dense<0.000000e+00> : vector<8x128xf32>
    %32 = tpu.matmul %30, %31, %cst_15 {dimension_numbers = #tpu.dot_dimension_numbers<[1], [0], [0], [1], [0, 0, 1, 1], [], []>} : vector<8x128xbf16>, vector<128x128xbf16>, vector<8x128xf32> -> vector<8x128xf32>
    %c0_16 = arith.constant 0 : index
    %c0_17 = arith.constant 0 : index
    %33 = vector.load %arg5[%c0_16, %c0_17] : memref<1x128xf32, #tpu.memory_space<vmem>>, vector<1x128xf32>
    %c0_18 = arith.constant 0 : index
    %c0_19 = arith.constant 0 : index
    %34 = vector.load %arg6[%c0_18, %c0_19] : memref<1x128xf32, #tpu.memory_space<vmem>>, vector<1x128xf32>
    %cst_20 = arith.constant dense<0.000000e+00> : vector<128xf32>
    %35 = vector.multi_reduction <add>, %32, %cst_20 [0] : vector<8x128xf32> to vector<128xf32>
    %36 = vector.shape_cast %35 : vector<128xf32> to vector<1x128xf32>
    %cst_21 = arith.constant 8.000000e+00 : f32
    %37 = vector.broadcast %cst_21 : f32 to vector<1x128xf32>
    %38 = arith.divf %36, %37 : vector<1x128xf32>
    %39 = arith.mulf %32, %32 : vector<8x128xf32>
    %cst_22 = arith.constant dense<0.000000e+00> : vector<128xf32>
    %40 = vector.multi_reduction <add>, %39, %cst_22 [0] : vector<8x128xf32> to vector<128xf32>
    %41 = vector.shape_cast %40 : vector<128xf32> to vector<1x128xf32>
    %cst_23 = arith.constant 8.000000e+00 : f32
    %42 = vector.broadcast %cst_23 : f32 to vector<1x128xf32>
    %43 = arith.divf %41, %42 : vector<1x128xf32>
    %44 = arith.mulf %38, %38 : vector<1x128xf32>
    %45 = arith.subf %43, %44 : vector<1x128xf32>
    %cst_24 = arith.constant 9.99999974E-6 : f32
    %46 = vector.broadcast %cst_24 : f32 to vector<1x128xf32>
    %47 = arith.addf %45, %46 : vector<1x128xf32>
    %48 = math.rsqrt %47 : vector<1x128xf32>
    %49 = arith.mulf %33, %48 : vector<1x128xf32>
    %50 = arith.mulf %38, %49 : vector<1x128xf32>
    %51 = arith.subf %34, %50 : vector<1x128xf32>
    %52 = vector.broadcast %49 : vector<1x128xf32> to vector<8x128xf32>
    %53 = arith.mulf %32, %52 : vector<8x128xf32>
    %54 = vector.broadcast %51 : vector<1x128xf32> to vector<8x128xf32>
    %55 = arith.addf %53, %54 : vector<8x128xf32>
    %cst_25 = arith.constant 1.000000e-01 : f32
    %56 = vector.broadcast %cst_25 : f32 to vector<8x128xf32>
    %57 = arith.mulf %56, %55 : vector<8x128xf32>
    %58 = arith.maximumf %55, %57 : vector<8x128xf32>
    %59 = arith.truncf %58 : vector<8x128xf32> to vector<8x128xbf16>
    %c0_26 = arith.constant 0 : index
    %c0_27 = arith.constant 0 : index
    %60 = vector.load %arg7[%c0_26, %c0_27] : memref<128x128xbf16, #tpu.memory_space<vmem>>, vector<128x128xbf16>
    %cst_28 = arith.constant dense<0.000000e+00> : vector<8x128xf32>
    %61 = tpu.matmul %59, %60, %cst_28 {dimension_numbers = #tpu.dot_dimension_numbers<[1], [0], [0], [1], [0, 0, 1, 1], [], []>} : vector<8x128xbf16>, vector<128x128xbf16>, vector<8x128xf32> -> vector<8x128xf32>
    %c0_29 = arith.constant 0 : index
    %c0_30 = arith.constant 0 : index
    %62 = vector.load %arg8[%c0_29, %c0_30] : memref<8x128xf32, #tpu.memory_space<vmem>>, vector<8x128xf32>
    tpu.vector_store %arg8[%c0_29, %c0_30], %61 {strides = array<i32>} : memref<8x128xf32, #tpu.memory_space<vmem>>, vector<8x128xf32>,
    return
  }
}

</mosaic_0001>

<bundles_post_ra>
// kernel: tpu_custom_call.1
= control target key start
LH: loop header
LB: loop body
LE: loop exit
PB: predicated region body
PF: predicated region fallthrough
CT: control target
= control target key end

     0   :  { %13 = vsyncpa [#allocation3], 0  ;;  %s885_s0 = inlined_call_operand.hbm [shape: f32[8,64], index: 0, kind: input, shape index: {}]   ;;  %s886_s1 = inlined_call_operand.hbm [shape: bf16[64,128], index: 1, kind: input, shape index: {}]   ;;  %s887_s2 = inlined_call_operand.vmem [shape: f32[1,128], index: 2, kind: input, shape index: {}]   ;;  %s888_s3 = inlined_call_operand.vmem [shape: f32[1,128], index: 3, kind: input, shape index: {}]   ;;  %s889_s4 = inlined_call_operand.hbm [shape: bf16[128,128], index: 4, kind: input, shape index: {}]   ;;  %s890_s5 = inlined_call_operand.vmem [shape: f32[1,128], index: 5, kind: input, shape index: {}]   ;;  %s891_s6 = inlined_call_operand.vmem [shape: f32[1,128], index: 6, kind: input, shape index: {}]   ;;  %s892_s7 = inlined_call_operand.hbm [shape: bf16[128,128], index: 7, kind: input, shape index: {}]   ;;  %s893_s8 = inlined_call_operand.hbm [shape: f32[8,128], index: 8, kind: output, shape index: {}]  }
   0x1   :  { %14 = vsyncpa [#allocation6], 0 }
   0x2   :  { %15 = vsyncpa [#allocation9], 0 }
   0x3   :  { %16 = vsyncpa [#allocation4], 0  ;;  %s718_s27 = smov [#allocation5]   ;;  %s600_s9 = scalar_lea.hbm %s886_s1, 512 }
   0x4   :  { %s32_s28 = sshll.u32 %s718_s27, 4  ;;  %p601_p0 = scmp.ne.s32.totalorder %s886_s1, %s600_s9  ;;  %s33_s28 = int_to_ptr.vmem [resolvable:$true] %s32_s28 }
   0x5   :  { %p604_p1 = scmp.lt.u32.totalorder %s600_s9, %s886_s1 }
   0x7   :  { %p606_p2 = pnand %p604_p1, %p601_p0 }
   0x9   :  { %609 = shalt.err (!%p606_p2)
}
   0xa   :  { %s610_s14 = scalar_lea.vmem %s33_s28, 512  ;;  %p615_p4 = scmp.lt.s32.totalorder %s33_s28, %s33_s28 }
   0xb   :  { %p611_p3 = scmp.ne.s32.totalorder %s33_s28, %s610_s14  ;;  %p616_p5 = scmp.lt.s32.totalorder %s610_s14, %s610_s14 }
   0xd   :  { %p617_p6 = por %p616_p5, %p615_p4 }
   0xf   :  { %p618_p7 = pnand %p617_p6, %p611_p3 }
  0x11   :  { %621 = shalt.err (!%p618_p7)
}
  0x12   :  { %s719_s15 = smov 64   ;;  %s720_s16 = smov 4  }
  0x13   :  { %38 = dma.hbm_to_vmem [thread:$0]  %s886_s1, 512, %s33_s28, [#allocation6], %s719_s15, %s719_s15, %s720_s16  }
  0x14   :  { %s721_s19 = smov [#allocation2]   ;;  %s722_s21 = smov [#allocation7]  }
  0x15   :  { %s23_s20 = sshll.u32 %s721_s19, 4  ;;  %s48_s22 = sshll.u32 %s722_s21, 4  ;;  %s24_s20 = int_to_ptr.vmem [resolvable:$true] %s23_s20  ;;  %s49_s22 = int_to_ptr.vmem [resolvable:$true] %s48_s22 }
  0x16   :  { %s622_s25 = scalar_lea.hbm %s885_s0, 128 }
  0x17   :  { %p623_p8 = scmp.ne.s32.totalorder %s885_s0, %s622_s25  ;;  %p626_p9 = scmp.lt.u32.totalorder %s622_s25, %s885_s0 }
  0x19   :  { %p628_p10 = pnand %p626_p9, %p623_p8 }
  0x1b   :  { %631 = shalt.err (!%p628_p10)
}
  0x1c   :  { %s632_s1 = scalar_lea.vmem %s24_s20, 128  ;;  %p637_p12 = scmp.lt.s32.totalorder %s24_s20, %s24_s20 }
  0x1d   :  { %p633_p11 = scmp.ne.s32.totalorder %s24_s20, %s632_s1  ;;  %p638_p13 = scmp.lt.s32.totalorder %s632_s1, %s632_s1 }
  0x1f   :  { %p639_p0 = por %p638_p13, %p637_p12 }
  0x21   :  { %p640_p1 = pnand %p639_p0, %p633_p11 }
  0x23   :  { %643 = shalt.err (!%p640_p1)
}
  0x24   :  { %26 = dma.hbm_to_vmem [thread:$0]  %s885_s0, 128, %s24_s20, [#allocation3]  }
  0x25   :  { %s644_s12 = scalar_lea.hbm %s889_s4, 1024 }
  0x26   :  { %p645_p2 = scmp.ne.s32.totalorder %s889_s4, %s644_s12  ;;  %p648_p3 = scmp.lt.u32.totalorder %s644_s12, %s889_s4 }
  0x28   :  { %p650_p4 = pnand %p648_p3, %p645_p2 }
  0x2a   :  { %653 = shalt.err (!%p650_p4)
}
  0x2b   :  { %s654_s19 = scalar_lea.vmem %s49_s22, 1024  ;;  %p659_p6 = scmp.lt.s32.totalorder %s49_s22, %s49_s22 }
  0x2c   :  { %p655_p5 = scmp.ne.s32.totalorder %s49_s22, %s654_s19  ;;  %p660_p7 = scmp.lt.s32.totalorder %s654_s19, %s654_s19 }
  0x2e   :  { %p661_p8 = por %p660_p7, %p659_p6 }
  0x30   :  { %p662_p9 = pnand %p661_p8, %p655_p5 }
  0x32   :  { %665 = shalt.err (!%p662_p9)
}
  0x33   :  { %54 = dma.hbm_to_vmem [thread:$0]  %s889_s4, 1024, %s49_s22, [#allocation6], %s719_s15, %s719_s15, %s720_s16  }
  0x34   :  { %s723_s21 = smov [#allocation8]   ;;  %s666_s26 = scalar_lea.hbm %s892_s7, 1024 }
  0x35   :  { %s64_s23 = sshll.u32 %s723_s21, 4  ;;  %p667_p10 = scmp.ne.s32.totalorder %s892_s7, %s666_s26  ;;  %s65_s23 = int_to_ptr.vmem [resolvable:$true] %s64_s23 }
  0x36   :  { %p670_p11 = scmp.lt.u32.totalorder %s666_s26, %s892_s7 }
  0x38   :  { %p672_p12 = pnand %p670_p11, %p667_p10 }
  0x3a   :  { %675 = shalt.err (!%p672_p12)
}
  0x3b   :  { %s676_s28 = scalar_lea.vmem %s65_s23, 1024  ;;  %p681_p0 = scmp.lt.s32.totalorder %s65_s23, %s65_s23 }
  0x3c   :  { %p677_p13 = scmp.ne.s32.totalorder %s65_s23, %s676_s28  ;;  %p682_p1 = scmp.lt.s32.totalorder %s676_s28, %s676_s28 }
  0x3e   :  { %p683_p2 = por %p682_p1, %p681_p0 }
  0x40   :  { %p684_p3 = pnand %p683_p2, %p677_p13 }
  0x42   :  { %687 = shalt.err (!%p684_p3)
}
  0x43   :  { %70 = dma.hbm_to_vmem [thread:$0]  %s892_s7, 1024, %s65_s23, [#allocation9], %s719_s15, %s719_s15, %s720_s16  }
  0x44   :  { %710 = dma.done.wait [#allocation3], 128  }
  0x45   :  { %711 = vsyncadd [#allocation3], 4294967168 }
  0x46   :  { %712 = dma.done.wait [#allocation6], 1536  }
  0x47   :  { %713 = vsyncadd [#allocation6], 4294965760 }
  0x48   :  { %714 = dma.done.wait [#allocation9], 1024  }
  0x49   :  { %715 = vsyncadd [#allocation9], 4294966272  ;;  %v724_v0 = vmov 0.0   ;;  %vm725_vm0 = vmmov 0   ;;  %v576_v1 = vld [vmem:[#allocation5] sm:$0xff]   ;;  %v577_v2 = vld [vmem:[#allocation5 + $0x8] sm:$0xff]   ;;  %v188_v37 = vlaneseq }
  0x4a   :  { %515 = vmatprep.subr.bf16.mxu0 %v724_v0  ;;  %523 = vmatprep.mubr.msk.bf16.mxu0 %vm725_vm0, %v724_v0  ;;  %v578_v3 = vld [vmem:[#allocation5 + $0x10] sm:$0xff]   ;;  %vm118_vm1 = vcmask 523264   ;;  %v579_v4 = vld [vmem:[#allocation5 + $0x18] sm:$0xff]   ;;  %v580_v7 = vld [vmem:[#allocation7] sm:$0xff]   ;;  %s726_s12 = smov [#allocation10]  }
  0x4b   :  { %527 = vmatprep.subr.bf16.mxu1 %v724_v0  ;;  %543 = vmatprep.mubr.msk.bf16.mxu1 %vm725_vm0, %v724_v0  ;;  %v84_v5 = vld [vmem:[#allocation2] sm:$0xff]  ;;  %v581_v8 = vld [vmem:[#allocation7 + $0x8] sm:$0xff]   ;;  %v582_v9 = vld [vmem:[#allocation7 + $0x10] sm:$0xff]   ;;  %v189_v38 = vshrl.u32 %v188_v37, 7 }
  0x4c   :  { %516 = vmatpush3.bf16.msra.mxu0 %v576_v1  ;;  %v85_v6 = vpack.c.bf16 %v84_v5, %v84_v5  ;;  %528 = vmatpush3.bf16.msra.mxu1 %v580_v7  ;;  %v583_v10 = vld [vmem:[#allocation7 + $0x18] sm:$0xff]   ;;  %v584_v11 = vld [vmem:[#allocation7 + $0x20] sm:$0xff]   ;;  %v585_v12 = vld [vmem:[#allocation7 + $0x28] sm:$0xff]  }
  0x4d   :  { %517 = vmatprep.subr.bf16.mxu0 %v724_v0  ;;  %529 = vmatprep.subr.bf16.mxu1 %v724_v0  ;;  %v586_v13 = vld [vmem:[#allocation7 + $0x30] sm:$0xff]   ;;  %v587_v14 = vld [vmem:[#allocation7 + $0x38] sm:$0xff]   ;;  %v851_v40 = vsub.s32 0, %v189_v38  ;;  %v588_v53 = vld [vmem:[#allocation8] sm:$0xff]  }
  0x4e   :  { %v162_v39 = vld [vmem:[%s887_s2] sm:$0x1]  ;;  %v589_v54 = vld [vmem:[#allocation8 + $0x8] sm:$0xff]   ;;  %v590_v55 = vld [vmem:[#allocation8 + $0x10] sm:$0xff]  }
  0x4f   :  { %v163_v43 = vld [vmem:[%s888_s3] sm:$0x1]  ;;  %v592_v57 = vld [vmem:[#allocation8 + $0x20] sm:$0xff]   ;;  %v593_v58 = vld [vmem:[#allocation8 + $0x28] sm:$0xff]  }
  0x50   :  { %518 = vmatpush3.bf16.msra.mxu0 %v577_v2  ;;  %530 = vmatpush3.bf16.msra.mxu1 %v581_v8  ;;  %v591_v56 = vld [vmem:[#allocation8 + $0x18] sm:$0xff]   ;;  %v594_v59 = vld [vmem:[#allocation8 + $0x30] sm:$0xff]  }
  0x51   :  { %519 = vmatprep.subr.bf16.mxu0 %v724_v0  ;;  %531 = vmatprep.subr.bf16.mxu1 %v724_v0  ;;  %v595_v60 = vld [vmem:[#allocation8 + $0x38] sm:$0xff]  }
  0x54   :  { %520 = vmatpush3.bf16.msra.mxu0 %v578_v3  ;;  %532 = vmatpush3.bf16.msra.mxu1 %v582_v9 }
  0x55   :  { %521 = vmatprep.subr.bf16.mxu0 %v724_v0  ;;  %533 = vmatprep.subr.bf16.mxu1 %v724_v0 }
  0x58   :  { %522 = vmatpush3.bf16.msra.mxu0 %v579_v4  ;;  %534 = vmatpush3.bf16.msra.mxu1 %v583_v10 }
  0x59   :  { %547 = vmatprep.subr.bf16.mxu0 %v724_v0  ;;  %535 = vmatprep.subr.bf16.mxu1 %v724_v0 }
  0x5b   :  { %524 = vmatmul.mubr.msk.bf16.vlgmr.msra.gmra.mrb[0].mxu0 %vm118_vm1, %v85_v6 }
  0x5c   :  { %563 = vmatprep.mubr.msk.bf16.mxu0 %vm725_vm0, %v724_v0  ;;  %536 = vmatpush3.bf16.msra.mxu1 %v584_v11 }
  0x5d   :  { %537 = vmatprep.subr.bf16.mxu1 %v724_v0  ;;  %548 = vmatpush3.bf16.msra.mxu0 %v588_v53 }
  0x5e   :  { %549 = vmatprep.subr.bf16.mxu0 %v724_v0 }
  0x60   :  { %538 = vmatpush3.bf16.msra.mxu1 %v585_v12 }
  0x61   :  { %539 = vmatprep.subr.bf16.mxu1 %v724_v0  ;;  %550 = vmatpush3.bf16.msra.mxu0 %v589_v54 }
  0x62   :  { %551 = vmatprep.subr.bf16.mxu0 %v724_v0 }
  0x64   :  { %540 = vmatpush3.bf16.msra.mxu1 %v586_v13 }
  0x65   :  { %541 = vmatprep.subr.bf16.mxu1 %v724_v0  ;;  %552 = vmatpush3.bf16.msra.mxu0 %v590_v55 }
  0x66   :  { %553 = vmatprep.subr.bf16.mxu0 %v724_v0 }
  0x68   :  { %542 = vmatpush3.bf16.msra.mxu1 %v587_v14 }
  0x69   :  { %554 = vmatpush3.bf16.msra.mxu0 %v591_v56 }
  0x6a   :  { %555 = vmatprep.subr.bf16.mxu0 %v724_v0 }
  0x6d   :  { %556 = vmatpush3.bf16.msra.mxu0 %v592_v57 }
  0x6e   :  { %557 = vmatprep.subr.bf16.mxu0 %v724_v0 }
  0x71   :  { %558 = vmatpush3.bf16.msra.mxu0 %v593_v58 }
  0x72   :  { %559 = vmatprep.subr.bf16.mxu0 %v724_v0 }
  0x75   :  { %560 = vmatpush3.bf16.msra.mxu0 %v594_v59 }
  0x76   :  { %561 = vmatprep.subr.bf16.mxu0 %v724_v0 }
  0x79   :  { %562 = vmatpush3.bf16.msra.mxu0 %v595_v60 }
 0x12e   :  { %v156_v15 = vpop.f32.mrb[0].mxu0 }
 0x12f   :  { %v164_v16 = vrot.slane %v156_v15, 4  ;;  %v172_v17 = vmul.f32 %v156_v15, %v156_v15  ;;  %v525_v18 = vpop.f32.mrb[1].mxu0 }
 0x130   :  { %v159_v19 = vpop.f32.mrb[2].mxu0 }
 0x131   :  { %v165_v20 = vadd.f32 %v164_v16, %v156_v15  ;;  %v173_v21 = vrot.slane %v172_v17, 4  ;;  %v526_v22 = vpop.f32.mrb[3].mxu0  ;;  %v308_v19 = vld [vmem:[%s890_s5] sm:$0x1]  ;;  %s460_s5 = sshll.u32 %s726_s12, 4  ;;  %s461_s5 = int_to_ptr.vmem [resolvable:$true] %s460_s5 }
 0x132   :  { %v309_v22 = vld [vmem:[%s891_s6] sm:$0x1]  ;;  %s688_s6 = scalar_lea.vmem %s461_s5, 128  ;;  %p693_p5 = scmp.lt.s32.totalorder %s461_s5, %s461_s5 }
 0x133   :  { %v166_v23 = vrot.slane %v165_v20, 2  ;;  %v174_v24 = vadd.f32 %v173_v21, %v172_v17  ;;  %p689_p4 = scmp.ne.s32.totalorder %s461_s5, %s688_s6  ;;  %p694_p6 = scmp.lt.s32.totalorder %s688_s6, %s688_s6 }
 0x135   :  { %v167_v25 = vadd.f32 %v166_v23, %v165_v20  ;;  %v175_v26 = vrot.slane %v174_v24, 2  ;;  %p695_p7 = por %p694_p6, %p693_p5 }
 0x137   :  { %v168_v27 = vrot.slane %v167_v25, 1  ;;  %v176_v28 = vadd.f32 %v175_v26, %v174_v24  ;;  %p696_p8 = pnand %p695_p7, %p689_p4 }
 0x139   :  { %v169_v29 = vadd.f32 %v168_v27, %v167_v25  ;;  %v177_v30 = vrot.slane %v176_v28, 1 }
 0x13b   :  { %v171_v31 = vmul.f32 0.125, %v169_v29  ;;  %v178_v32 = vadd.f32 %v177_v30, %v176_v28 }
 0x13d   :  { %v179_v33 = vmul.f32 0.125, %v178_v32  ;;  %v180_v34 = vmul.f32 %v171_v31, %v171_v31 }
 0x13f   :  { %v181_v35 = vsub.f32 %v179_v33, %v180_v34 }
 0x141   :  { %v182_v36 = vadd.f32 1e-05, %v181_v35 }
 0x143   :  { %596 = vrsqrt.f32 %v182_v36 }
 0x14d   :  { %v597_v41 = vpop.eup %596 }
 0x14e   :  { %v184_v42 = vmul.f32 %v597_v41, %v162_v39 }
 0x150   :  { %v185_v44 = vmul.f32 %v184_v42, %v171_v31  ;;  %v191_v45 = vrot.slane %v184_v42, %v851_v40 }
 0x152   :  { %v186_v46 = vsub.f32 %v163_v43, %v185_v44  ;;  %v193_v47 = vmul.f32 %v191_v45, %v156_v15 }
 0x154   :  { %v198_v48 = vrot.slane %v186_v46, %v851_v40 }
 0x156   :  { %v200_v49 = vadd.f32 %v198_v48, %v193_v47 }
 0x158   :  { %v201_v50 = vmul.f32 0.1, %v200_v49 }
 0x15a   :  { %v202_v51 = vmax.f32 %v200_v49, %v201_v50 }
 0x15c   :  { %v203_v52 = vpack.c.bf16 %v202_v51, %v202_v51 }
 0x15e   :  { %544 = vmatmul.mubr.bf16.vlgmr.msra.gmra.mrb[0].mxu1 %v203_v52 }
 0x231   :  { %v302_v61 = vpop.f32.mrb[0].mxu1 }
 0x232   :  { %v310_v62 = vrot.slane %v302_v61, 4  ;;  %v317_v63 = vmul.f32 %v302_v61, %v302_v61  ;;  %v545_v1 = vpop.f32.mrb[1].mxu1 }
 0x233   :  { %v305_v2 = vpop.f32.mrb[2].mxu1 }
 0x234   :  { %v311_v3 = vadd.f32 %v310_v62, %v302_v61  ;;  %v318_v4 = vrot.slane %v317_v63, 4  ;;  %v546_v5 = vpop.f32.mrb[3].mxu1 }
 0x236   :  { %v312_v6 = vrot.slane %v311_v3, 2  ;;  %v319_v7 = vadd.f32 %v318_v4, %v317_v63 }
 0x238   :  { %v313_v8 = vadd.f32 %v312_v6, %v311_v3  ;;  %v320_v9 = vrot.slane %v319_v7, 2 }
 0x23a   :  { %v314_v10 = vrot.slane %v313_v8, 1  ;;  %v321_v11 = vadd.f32 %v320_v9, %v319_v7 }
 0x23c   :  { %v315_v12 = vadd.f32 %v314_v10, %v313_v8  ;;  %v322_v13 = vrot.slane %v321_v11, 1 }
 0x23e   :  { %v316_v14 = vmul.f32 0.125, %v315_v12  ;;  %v323_v0 = vadd.f32 %v322_v13, %v321_v11 }
 0x240   :  { %v324_v15 = vmul.f32 0.125, %v323_v0  ;;  %v325_v16 = vmul.f32 %v316_v14, %v316_v14 }
 0x242   :  { %v326_v17 = vsub.f32 %v324_v15, %v325_v16 }
 0x244   :  { %v327_v18 = vadd.f32 1e-05, %v326_v17 }
 0x246   :  { %598 = vrsqrt.f32 %v327_v18 }
 0x250   :  { %v599_v20 = vpop.eup %598 }
 0x251   :  { %v329_v21 = vmul.f32 %v599_v20, %v308_v19 }
 0x253   :  { %v330_v23 = vmul.f32 %v329_v21, %v316_v14  ;;  %v336_v24 = vrot.slane %v329_v21, %v851_v40 }
 0x255   :  { %v331_v25 = vsub.f32 %v309_v22, %v330_v23  ;;  %v338_v26 = vmul.f32 %v336_v24, %v302_v61 }
 0x257   :  { %v343_v27 = vrot.slane %v331_v25, %v851_v40 }
 0x259   :  { %v345_v28 = vadd.f32 %v343_v27, %v338_v26 }
 0x25b   :  { %v346_v29 = vmul.f32 0.1, %v345_v28 }
 0x25d   :  { %v347_v30 = vmax.f32 %v345_v28, %v346_v29 }
 0x25f   :  { %v348_v31 = vpack.c.bf16 %v347_v30, %v347_v30 }
 0x261   :  { %564 = vmatmul.mubr.bf16.vlgmr.msra.gmra.mrb[4].mxu0 %v348_v31 }
 0x334   :  { %v447_v32 = vpop.f32.mrb[4].mxu0 }
 0x335   :  { %453 = vst [vmem:[#allocation10] sm:$0xff] %v447_v32  ;;  %v565_v33 = vpop.f32.mrb[5].mxu0 }
 0x336   :  { %v450_v34 = vpop.f32.mrb[6].mxu0 }
 0x337   :  { %699 = shalt.err (!%p696_p8)
}
 0x338   :  { %s700_s17 = scalar_lea.hbm %s893_s8, 128 }
 0x339   :  { %p701_p9 = scmp.ne.s32.totalorder %s893_s8, %s700_s17  ;;  %p704_p10 = scmp.lt.u32.totalorder %s700_s17, %s893_s8 }
 0x33b   :  { %p706_p11 = pnand %p704_p10, %p701_p9 }
 0x33d   :  { %709 = shalt.err (!%p706_p11)
}
 0x33e   :  { %463 = dma.vmem_to_hbm [thread:$0]  %s461_s5, 128, %s893_s8, [#allocation4]   ;;  %v566_v35 = vpop.f32.mrb[7].mxu0 }
 0x33f   :  { %716 = dma.done.wait [#allocation4], 128  }
 0x340   :  { %717 = vsyncadd [#allocation4], 4294967168 }
 0x341   :  { %467 = vsyncpa [#allocation3], 1 }
 0x342   :  { %468 = vsyncpa [#allocation6], 1 }
 0x343   :  { %469 = vsyncpa [#allocation9], 1 }
 0x344   :  { %470 = vsyncpa [#allocation4], 1 }

</bundles_post_ra>
